<compile_context>
chip_gen: v7x
topology: tpu7x:2x2x1
jax: 0.10.0
libtpu: 0.0.40
codegen_flags: <defaults>
</compile_context>

<pallas_src>
import functools
from typing import NamedTuple

import jax
import jax.numpy as jnp
from jax.experimental import pallas as pl
from jax.experimental.pallas import tpu as pltpu


def _round_up(x, m):
    return ((x + m - 1) // m) * m


def _cdiv(a, b):
    return (a + b - 1) // b


def _pad_to(arr, shape):
    pads = [(0, t - s) for s, t in zip(arr.shape, shape)]
    if all(p == (0, 0) for p in pads):
        return arr
    return jnp.pad(arr, pads)


def _tpu_vmem_capacity_bytes():
    """Physical VMEM per core; conservative (v7x-sized) fallback if unknown."""
    try:
        return int(pltpu.get_tpu_info().vmem_capacity_bytes)
    except Exception:
        return 64 * 1024 * 1024


# --------------------------------------------------------------------------
# Kernel
# --------------------------------------------------------------------------
def _ffn_kernel(x_ref, w1j_ref, w2_ref, w3_ref, b_ref, o_ref, *,
                hid_pad, compute_dtype):
    """One row-tile of the feed-forward network with jump connection.

    w1j = [W1 | Wj]  (fused first-layer + jump weights, shared LHS x)
    b rows: 0 = b1, 1 = bj, 2 = b2, 3 = b3  (kept in f32)

    block_out = relu(relu(relu(x@W1+b1)@W2+b2)@W3+b3)
    jump_out  = x@Wj + bj
    out       = block_out + jump_out
    """
    x = x_ref[...]                                         # [T, in_pad]

    # Fused first layer + jump connection: one MXU pass over the shared LHS.
    h1j = jnp.dot(x, w1j_ref[...],
                  preferred_element_type=jnp.float32)      # [T, 2*hid_pad] f32

    h1 = jnp.maximum(h1j[:, :hid_pad] + b_ref[0:1, :], 0.0)
    # Cast the jump term down immediately so we don't carry a [T, hid] f32
    # value live across two subsequent matmuls (VPU cast is free filler).
    jump = (h1j[:, hid_pad:] + b_ref[1:2, :]).astype(compute_dtype)

    h2 = jnp.dot(h1.astype(compute_dtype), w2_ref[...],
                 preferred_element_type=jnp.float32) + b_ref[2:3, :]
    h2 = jnp.maximum(h2, 0.0)

    h3 = jnp.dot(h2.astype(compute_dtype), w3_ref[...],
                 preferred_element_type=jnp.float32) + b_ref[3:4, :]
    h3 = jnp.maximum(h3, 0.0)

    o_ref[...] = (h3 + jump.astype(jnp.float32)).astype(o_ref.dtype)


# --------------------------------------------------------------------------
# Parameter preprocessing (done ONCE, not per forward call)
# --------------------------------------------------------------------------
class PreppedParams(NamedTuple):
    w1j: jax.Array          # [in_pad, 2*hid_pad], compute_dtype
    w2: jax.Array           # [hid_pad, hid_pad], compute_dtype
    w3: jax.Array           # [hid_pad, hid_pad], compute_dtype
    bias: jax.Array         # [4, hid_pad], f32  (b1, bj, b2, b3)
    in_dim: int
    hid_dim: int
    in_pad: int
    hid_pad: int
    compute_dtype: jnp.dtype


def prepare_params(params, *, compute_dtype=jnp.bfloat16, lane_multiple=None):
    """Pad, fuse and cast the weights once; pass the result to the forward."""
    w1, b1, w2, b2, w3, b3, wj, bj = params
    in_dim, hid_dim = w1.shape

    if lane_multiple is None:
        # 256-wide MXU columns pay off on v6e/v7x for large dims; keep 128 for
        # small dims (and pass lane_multiple=128 explicitly on v5e).
        lane_multiple = 256 if min(in_dim, hid_dim) >= 512 else 128

    in_pad = _round_up(in_dim, lane_multiple)
    hid_pad = _round_up(hid_dim, lane_multiple)

    # Zero-padded rows/cols contribute exact zeros through matmul/ReLU, so the
    # un-padded slice of the output is unchanged.
    w1_p = _pad_to(w1, (in_pad, hid_pad))
    wj_p = _pad_to(wj, (in_pad, hid_pad))
    w1j = jnp.concatenate([w1_p, wj_p], axis=1).astype(compute_dtype)
    w2_p = _pad_to(w2, (hid_pad, hid_pad)).astype(compute_dtype)
    w3_p = _pad_to(w3, (hid_pad, hid_pad)).astype(compute_dtype)
    bias = jnp.stack([
        _pad_to(b1, (hid_pad,)),
        _pad_to(bj, (hid_pad,)),
        _pad_to(b2, (hid_pad,)),
        _pad_to(b3, (hid_pad,)),
    ], axis=0).astype(jnp.float32)

    return PreppedParams(w1j, w2_p, w3_p, bias, in_dim, hid_dim,
                         in_pad, hid_pad, jnp.dtype(compute_dtype))


# --------------------------------------------------------------------------
# Forward wrapper
# --------------------------------------------------------------------------
def feedforward_network(feat, prep: PreppedParams, *, row_tile=None,
                        out_dtype=None):
    """Apply the FeedforwardNetwork to feat: [N, in_dim] -> [N, hid_dim]."""
    N, in_dim = feat.shape
    assert in_dim == prep.in_dim, "feat feature dim does not match params"
    in_pad, hid_pad = prep.in_pad, prep.hid_pad
    compute_dtype = prep.compute_dtype
    out_dtype = jnp.dtype(feat.dtype if out_dtype is None else out_dtype)

    vmem_cap = _tpu_vmem_capacity_bytes()
    vmem_budget = int(vmem_cap * 0.82)        # headroom for Mosaic scratch/sems

    if row_tile is None:
        # Bigger tiles on 128 MiB parts (v5e/v6e); keep 256 on v7x (64 MiB).
        row_tile = 512 if vmem_cap >= 96 * 1024 * 1024 else 256

    # Balanced row tiles (multiple of 16 sublanes: covers bf16 packing & f32).
    sub = 16
    num_tiles = max(1, _cdiv(N, row_tile))
    tile = max(sub, _round_up(_cdiv(N, num_tiles), sub))
    # Guarantee >=2 grid steps when N allows, so v7x's 2nd TensorCore gets work.
    if _cdiv(N, tile) < 2 and N > sub:
        tile = max(sub, _round_up(_cdiv(N, 2), sub))
    n_pad = _round_up(N, tile)
    grid = (n_pad // tile,)

    x_p = _pad_to(feat, (n_pad, in_pad)).astype(compute_dtype)

    # VMEM accounting: single-buffered resident weights, double-buffered x/out,
    # f32 intermediates (h1j counts 2x hid) + compute-dtype jump.
    csize = jnp.dtype(compute_dtype).itemsize
    osize = out_dtype.itemsize
    weight_bytes = (prep.w1j.size + prep.w2.size + prep.w3.size) * csize \
        + prep.bias.size * 4
    io_bytes = 2 * tile * in_pad * csize + 2 * tile * hid_pad * osize
    interm_bytes = tile * hid_pad * 4 * 4 + tile * hid_pad * csize
    est = weight_bytes + io_bytes + interm_bytes
    if est > vmem_budget:
        # TODO(synk): hidden-dim tiled fallback (second grid axis or
        # pltpu.emit_pipeline over column blocks of W2/W3 with an f32 VMEM
        # accumulator) so very large hid_dim degrades gracefully instead of
        # failing, especially on v7x's 64 MiB VMEM.
        raise ValueError(
            f"FFN kernel needs ~{est >> 20} MiB VMEM but only "
            f"{vmem_budget >> 20} MiB is available; hid_dim too large for the "
            f"fully-resident-weights path.")
    vmem_limit = int(min(max(est * 5 // 4 + (2 << 20), 32 * 1024 * 1024),
                         vmem_budget))

    kernel = functools.partial(_ffn_kernel, hid_pad=hid_pad,
                               compute_dtype=compute_dtype)

    resident = pl.Buffered(1)   # constant index map -> fetched once, no 2x buf
    out = pl.pallas_call(
        kernel,
        out_shape=jax.ShapeDtypeStruct((n_pad, hid_pad), out_dtype),
        grid_spec=pltpu.PrefetchScalarGridSpec(
            num_scalar_prefetch=0,
            grid=grid,
            in_specs=[
                pl.BlockSpec((tile, in_pad), lambda i: (i, 0)),          # x
                pl.BlockSpec((in_pad, 2 * hid_pad), lambda i: (0, 0),
                             pipeline_mode=resident),                   # [W1|Wj]
                pl.BlockSpec((hid_pad, hid_pad), lambda i: (0, 0),
                             pipeline_mode=resident),                   # W2
                pl.BlockSpec((hid_pad, hid_pad), lambda i: (0, 0),
                             pipeline_mode=resident),                   # W3
                pl.BlockSpec((4, hid_pad), lambda i: (0, 0),
                             pipeline_mode=resident),                   # biases
            ],
            out_specs=pl.BlockSpec((tile, hid_pad), lambda i: (i, 0)),
        ),
        compiler_params=pltpu.CompilerParams(
            dimension_semantics=("parallel",),
            vmem_limit_bytes=vmem_limit,
        ),
    )(x_p, prep.w1j, prep.w2, prep.w3, prep.bias)

    return out[:N, :prep.hid_dim]


# --------------------------------------------------------------------------
# Init + pure-JAX reference
# --------------------------------------------------------------------------
def init_params(key, in_dim, hid_dim, dtype=jnp.float32):
    """PyTorch-Linear-style init (uniform +-1/sqrt(fan_in)); weights [in, out]."""
    keys = jax.random.split(key, 8)

    def linear(kw, kb, fan_in, fan_out):
        bound = 1.0 / jnp.sqrt(fan_in)
        w = jax.random.uniform(kw, (fan_in, fan_out), dtype, -bound, bound)
        b = jax.random.uniform(kb, (fan_out,), dtype, -bound, bound)
        return w, b

    w1, b1 = linear(keys[0], keys[1], in_dim, hid_dim)
    w2, b2 = linear(keys[2], keys[3], hid_dim, hid_dim)
    w3, b3 = linear(keys[4], keys[5], hid_dim, hid_dim)
    wj, bj = linear(keys[6], keys[7], in_dim, hid_dim)
    return (w1, b1, w2, b2, w3, b3, wj, bj)


def reference_ffn(feat, params):
    """Pure-JAX f32 reference for correctness checking."""
    w1, b1, w2, b2, w3, b3, wj, bj = params
    h = jnp.maximum(feat @ w1 + b1, 0.0)
    h = jnp.maximum(h @ w2 + b2, 0.0)
    h = jnp.maximum(h @ w3 + b3, 0.0)
    return h + (feat @ wj + bj)


if __name__ == "__main__":
    key = jax.random.PRNGKey(0)
    k_feat, k_params = jax.random.split(key)

    N, in_dim, hid_dim = 16, 8, 32   # small shapes; feat is [N, in_dim]
    feat = jax.random.normal(k_feat, (N, in_dim), dtype=jnp.float32)
    params = init_params(k_params, in_dim, hid_dim)

    ref = reference_ffn(feat, params)

    # f32 compute path: strict check against the f32 reference.
    prep_f32 = prepare_params(params, compute_dtype=jnp.float32)
    out_f32 = jax.block_until_ready(feedforward_network(feat, prep_f32))
    assert out_f32.shape == (N, hid_dim)
    assert jnp.allclose(out_f32, ref, atol=1e-5, rtol=1e-5), "f32 mismatch vs reference"

    # bf16 MXU path (f32 accumulation; bf16 inter-layer activations & jump):
    # looser tolerance vs the f32 reference.
    prep_bf16 = prepare_params(params, compute_dtype=jnp.bfloat16)
    out_bf16 = jax.block_until_ready(feedforward_network(feat, prep_bf16))
    assert out_bf16.shape == (N, hid_dim)
    assert jnp.allclose(out_bf16, ref, atol=5e-2, rtol=5e-2), "bf16 mismatch vs reference"

    print("KERNEL_OK")
</pallas_src>

<mosaic_0001>
module attributes {stable_mosaic.version = 11 : i64} {
  func.func @_ffn_kernel(%arg0: i32, %arg1: memref<16x128xf32, #tpu.memory_space<vmem>>, %arg2: memref<128x256xf32, #tpu.memory_space<vmem>>, %arg3: memref<128x128xf32, #tpu.memory_space<vmem>>, %arg4: memref<128x128xf32, #tpu.memory_space<vmem>>, %arg5: memref<4x128xf32, #tpu.memory_space<vmem>>, %arg6: memref<16x128xf32, #tpu.memory_space<vmem>>) attributes {dimension_semantics = [#tpu.dimension_semantics<parallel>], iteration_bounds = array<i64: 1>, scalar_prefetch = 0 : i64, scratch_operands = 0 : i64, tpu.core_type = #tpu.core_type<tc>, window_params = [{transform_indices = @transform_0, window_bounds = array<i64: 16, 128>}, {pipeline_mode = #tpu.pipeline_mode<synchronous>, transform_indices = @transform_1, window_bounds = array<i64: 128, 256>}, {pipeline_mode = #tpu.pipeline_mode<synchronous>, transform_indices = @transform_2, window_bounds = array<i64: 128, 128>}, {pipeline_mode = #tpu.pipeline_mode<synchronous>, transform_indices = @transform_3, window_bounds = array<i64: 128, 128>}, {pipeline_mode = #tpu.pipeline_mode<synchronous>, transform_indices = @transform_4, window_bounds = array<i64: 4, 128>}, {transform_indices = @transform_5, window_bounds = array<i64: 16, 128>}]} {
    %c0 = arith.constant 0 : index
    %c0_0 = arith.constant 0 : index
    %0 = vector.load %arg1[%c0, %c0_0] : memref<16x128xf32, #tpu.memory_space<vmem>>, vector<16x128xf32>
    %c0_1 = arith.constant 0 : index
    %c0_2 = arith.constant 0 : index
    %1 = vector.load %arg2[%c0_1, %c0_2] : memref<128x256xf32, #tpu.memory_space<vmem>>, vector<128x256xf32>
    %cst = arith.constant dense<0.000000e+00> : vector<16x256xf32>
    %2 = tpu.matmul %0, %1, %cst {dimension_numbers = #tpu.dot_dimension_numbers<[1], [0], [0], [1], [0, 0, 1, 1], [], []>} : vector<16x128xf32>, vector<128x256xf32>, vector<16x256xf32> -> vector<16x256xf32>
    %3 = vector.extract_strided_slice %2 {offsets = [0, 0], sizes = [16, 128], strides = [1, 1]} : vector<16x256xf32> to vector<16x128xf32>
    %c0_3 = arith.constant 0 : index
    %c0_4 = arith.constant 0 : index
    %4 = vector.load %arg5[%c0_3, %c0_4] : memref<4x128xf32, #tpu.memory_space<vmem>>, vector<1x128xf32>
    %5 = vector.broadcast %4 : vector<1x128xf32> to vector<16x128xf32>
    %6 = arith.addf %3, %5 : vector<16x128xf32>
    %cst_5 = arith.constant 0.000000e+00 : f32
    %7 = vector.broadcast %cst_5 : f32 to vector<16x128xf32>
    %8 = arith.maximumf %6, %7 : vector<16x128xf32>
    %9 = vector.extract_strided_slice %2 {offsets = [0, 128], sizes = [16, 128], strides = [1, 1]} : vector<16x256xf32> to vector<16x128xf32>
    %c1 = arith.constant 1 : index
    %c0_6 = arith.constant 0 : index
    %10 = vector.load %arg5[%c1, %c0_6] : memref<4x128xf32, #tpu.memory_space<vmem>>, vector<1x128xf32>
    %11 = vector.broadcast %10 : vector<1x128xf32> to vector<16x128xf32>
    %12 = arith.addf %9, %11 : vector<16x128xf32>
    %c0_7 = arith.constant 0 : index
    %c0_8 = arith.constant 0 : index
    %13 = vector.load %arg3[%c0_7, %c0_8] : memref<128x128xf32, #tpu.memory_space<vmem>>, vector<128x128xf32>
    %cst_9 = arith.constant dense<0.000000e+00> : vector<16x128xf32>
    %14 = tpu.matmul %8, %13, %cst_9 {dimension_numbers = #tpu.dot_dimension_numbers<[1], [0], [0], [1], [0, 0, 1, 1], [], []>} : vector<16x128xf32>, vector<128x128xf32>, vector<16x128xf32> -> vector<16x128xf32>
    %c2 = arith.constant 2 : index
    %c0_10 = arith.constant 0 : index
    %15 = vector.load %arg5[%c2, %c0_10] : memref<4x128xf32, #tpu.memory_space<vmem>>, vector<1x128xf32>
    %16 = vector.broadcast %15 : vector<1x128xf32> to vector<16x128xf32>
    %17 = arith.addf %14, %16 : vector<16x128xf32>
    %cst_11 = arith.constant 0.000000e+00 : f32
    %18 = vector.broadcast %cst_11 : f32 to vector<16x128xf32>
    %19 = arith.maximumf %17, %18 : vector<16x128xf32>
    %c0_12 = arith.constant 0 : index
    %c0_13 = arith.constant 0 : index
    %20 = vector.load %arg4[%c0_12, %c0_13] : memref<128x128xf32, #tpu.memory_space<vmem>>, vector<128x128xf32>
    %cst_14 = arith.constant dense<0.000000e+00> : vector<16x128xf32>
    %21 = tpu.matmul %19, %20, %cst_14 {dimension_numbers = #tpu.dot_dimension_numbers<[1], [0], [0], [1], [0, 0, 1, 1], [], []>} : vector<16x128xf32>, vector<128x128xf32>, vector<16x128xf32> -> vector<16x128xf32>
    %c3 = arith.constant 3 : index
    %c0_15 = arith.constant 0 : index
    %22 = vector.load %arg5[%c3, %c0_15] : memref<4x128xf32, #tpu.memory_space<vmem>>, vector<1x128xf32>
    %23 = vector.broadcast %22 : vector<1x128xf32> to vector<16x128xf32>
    %24 = arith.addf %21, %23 : vector<16x128xf32>
    %cst_16 = arith.constant 0.000000e+00 : f32
    %25 = vector.broadcast %cst_16 : f32 to vector<16x128xf32>
    %26 = arith.maximumf %24, %25 : vector<16x128xf32>
    %27 = arith.addf %26, %12 : vector<16x128xf32>
    %c0_17 = arith.constant 0 : index
    %c0_18 = arith.constant 0 : index
    %28 = vector.load %arg6[%c0_17, %c0_18] : memref<16x128xf32, #tpu.memory_space<vmem>>, vector<16x128xf32>
    tpu.vector_store %arg6[%c0_17, %c0_18], %27 {strides = array<i32>} : memref<16x128xf32, #tpu.memory_space<vmem>>, vector<16x128xf32>,
    return
  }
  func.func @transform_0(%arg0: i32) -> (i32, i32) {
    %c0_i32 = arith.constant 0 : i32
    %c0_i32_0 = arith.constant 0 : i32
    return %arg0, %c0_i32 : i32, i32
  }
  func.func @transform_1(%arg0: i32) -> (i32, i32) {
    %c0_i32 = arith.constant 0 : i32
    %c0_i32_0 = arith.constant 0 : i32
    %c0_i32_1 = arith.constant 0 : i32
    return %c0_i32, %c0_i32_0 : i32, i32
  }
  func.func @transform_2(%arg0: i32) -> (i32, i32) {
    %c0_i32 = arith.constant 0 : i32
    %c0_i32_0 = arith.constant 0 : i32
    %c0_i32_1 = arith.constant 0 : i32
    return %c0_i32, %c0_i32_0 : i32, i32
  }
  func.func @transform_3(%arg0: i32) -> (i32, i32) {
    %c0_i32 = arith.constant 0 : i32
    %c0_i32_0 = arith.constant 0 : i32
    %c0_i32_1 = arith.constant 0 : i32
    return %c0_i32, %c0_i32_0 : i32, i32
  }
  func.func @transform_4(%arg0: i32) -> (i32, i32) {
    %c0_i32 = arith.constant 0 : i32
    %c0_i32_0 = arith.constant 0 : i32
    %c0_i32_1 = arith.constant 0 : i32
    return %c0_i32, %c0_i32_0 : i32, i32
  }
  func.func @transform_5(%arg0: i32) -> (i32, i32) {
    %c0_i32 = arith.constant 0 : i32
    %c0_i32_0 = arith.constant 0 : i32
    return %arg0, %c0_i32 : i32, i32
  }
}

</mosaic_0001>

<bundles_post_ra>
// kernel: tpu_custom_call.1
= control target key start
LH: loop header
LB: loop body
LE: loop exit
PB: predicated region body
PF: predicated region fallthrough
CT: control target
= control target key end

     0   :  { %10 = vsyncpa [#allocation3], 0  ;;  %s889_s0 = inlined_call_operand.hbm [shape: f32[16,128], index: 0, kind: input, shape index: {}]   ;;  %s890_s1 = inlined_call_operand.hbm [shape: f32[128,256], index: 1, kind: input, shape index: {}]   ;;  %s891_s2 = inlined_call_operand.hbm [shape: f32[128,128], index: 2, kind: input, shape index: {}]   ;;  %s892_s3 = inlined_call_operand.hbm [shape: f32[128,128], index: 3, kind: input, shape index: {}]   ;;  %s893_s4 = inlined_call_operand.vmem [shape: f32[4,128], index: 4, kind: input, shape index: {}]   ;;  %s894_s5 = inlined_call_operand.hbm [shape: f32[16,128], index: 5, kind: output, shape index: {}]  }
   0x1   :  { %11 = vsyncpa [#allocation6], 0 }
   0x2   :  { %12 = vsyncpa [#allocation9], 0 }
   0x3   :  { %13 = vsyncpa [#allocation4], 0  ;;  %s756_s18 = smov [#allocation5]   ;;  %s638_s22 = scalar_lea.hbm %s890_s1, 4096 }
   0x4   :  { %s31_s19 = sshll.u32 %s756_s18, 4  ;;  %p639_p0 = scmp.ne.s32.totalorder %s890_s1, %s638_s22  ;;  %s32_s19 = int_to_ptr.vmem [resolvable:$true] %s31_s19 }
   0x5   :  { %p642_p1 = scmp.lt.u32.totalorder %s638_s22, %s890_s1 }
   0x7   :  { %p644_p2 = pnand %p642_p1, %p639_p0 }
   0x9   :  { %647 = shalt.err (!%p644_p2)
}
   0xa   :  { %s648_s27 = scalar_lea.vmem %s32_s19, 4096  ;;  %p653_p4 = scmp.lt.s32.totalorder %s32_s19, %s32_s19 }
   0xb   :  { %p649_p3 = scmp.ne.s32.totalorder %s32_s19, %s648_s27  ;;  %p654_p5 = scmp.lt.s32.totalorder %s648_s27, %s648_s27 }
   0xd   :  { %p655_p6 = por %p654_p5, %p653_p4 }
   0xf   :  { %p656_p7 = pnand %p655_p6, %p649_p3 }
  0x11   :  { %659 = shalt.err (!%p656_p7)
}
  0x12   :  { %s757_s28 = smov 256   ;;  %s758_s29 = smov 16  }
  0x13   :  { %37 = dma.hbm_to_vmem [thread:$0]  %s890_s1, 4096, %s32_s19, [#allocation6], %s757_s28, %s757_s28, %s758_s29  }
  0x14   :  { %s759_s7 = smov [#allocation2]   ;;  %s660_s11 = scalar_lea.hbm %s889_s0, 256 }
  0x15   :  { %s19_s8 = sshll.u32 %s759_s7, 4  ;;  %p661_p8 = scmp.ne.s32.totalorder %s889_s0, %s660_s11  ;;  %s20_s8 = int_to_ptr.vmem [resolvable:$true] %s19_s8 }
  0x16   :  { %p664_p9 = scmp.lt.u32.totalorder %s660_s11, %s889_s0 }
  0x18   :  { %p666_p10 = pnand %p664_p9, %p661_p8 }
  0x1a   :  { %669 = shalt.err (!%p666_p10)
}
  0x1b   :  { %s670_s16 = scalar_lea.vmem %s20_s8, 256  ;;  %p675_p12 = scmp.lt.s32.totalorder %s20_s8, %s20_s8 }
  0x1c   :  { %p671_p11 = scmp.ne.s32.totalorder %s20_s8, %s670_s16  ;;  %p676_p13 = scmp.lt.s32.totalorder %s670_s16, %s670_s16 }
  0x1e   :  { %p677_p0 = por %p676_p13, %p675_p12 }
  0x20   :  { %p678_p1 = pnand %p677_p0, %p671_p11 }
  0x22   :  { %681 = shalt.err (!%p678_p1)
}
  0x23   :  { %s760_s1 = smov 128   ;;  %s761_s17 = smov 8  }
  0x24   :  { %25 = dma.hbm_to_vmem [thread:$0]  %s889_s0, 256, %s20_s8, [#allocation3], %s760_s1, %s760_s1, %s761_s17  }
  0x25   :  { %s762_s20 = smov [#allocation7]   ;;  %s763_s22 = smov [#allocation8]  }
  0x26   :  { %s43_s21 = sshll.u32 %s762_s20, 4  ;;  %s55_s23 = sshll.u32 %s763_s22, 4  ;;  %s44_s21 = int_to_ptr.vmem [resolvable:$true] %s43_s21  ;;  %s823_s23 = int_to_ptr.vmem [resolvable:$true] %s55_s23 }
  0x27   :  { %s682_s26 = scalar_lea.hbm %s891_s2, 2048 }
  0x28   :  { %p683_p2 = scmp.ne.s32.totalorder %s891_s2, %s682_s26  ;;  %p686_p3 = scmp.lt.u32.totalorder %s682_s26, %s891_s2 }
  0x2a   :  { %p688_p4 = pnand %p686_p3, %p683_p2 }
  0x2c   :  { %691 = shalt.err (!%p688_p4)
}
  0x2d   :  { %s692_s0 = scalar_lea.vmem %s44_s21, 2048  ;;  %p697_p6 = scmp.lt.s32.totalorder %s44_s21, %s44_s21 }
  0x2e   :  { %p693_p5 = scmp.ne.s32.totalorder %s44_s21, %s692_s0  ;;  %p698_p7 = scmp.lt.s32.totalorder %s692_s0, %s692_s0 }
  0x30   :  { %p699_p8 = por %p698_p7, %p697_p6 }
  0x32   :  { %p700_p9 = pnand %p699_p8, %p693_p5 }
  0x34   :  { %703 = shalt.err (!%p700_p9)
}
  0x35   :  { %49 = dma.hbm_to_vmem [thread:$0]  %s891_s2, 2048, %s44_s21, [#allocation6], %s760_s1, %s760_s1, %s761_s17  }
  0x36   :  { %s704_s10 = scalar_lea.hbm %s892_s3, 2048 }
  0x37   :  { %p705_p10 = scmp.ne.s32.totalorder %s892_s3, %s704_s10  ;;  %p708_p11 = scmp.lt.u32.totalorder %s704_s10, %s892_s3 }
  0x39   :  { %p710_p12 = pnand %p708_p11, %p705_p10 }
  0x3b   :  { %713 = shalt.err (!%p710_p12)
}
  0x3c   :  { %s714_s15 = scalar_lea.vmem %s823_s23, 2048  ;;  %p719_p0 = scmp.lt.s32.totalorder %s823_s23, %s823_s23 }
  0x3d   :  { %p715_p13 = scmp.ne.s32.totalorder %s823_s23, %s714_s15  ;;  %p720_p1 = scmp.lt.s32.totalorder %s714_s15, %s714_s15 }
  0x3f   :  { %p721_p2 = por %p720_p1, %p719_p0 }
  0x41   :  { %p722_p3 = pnand %p721_p2, %p715_p13 }
  0x43   :  { %725 = shalt.err (!%p722_p3)
}
  0x44   :  { %61 = dma.hbm_to_vmem [thread:$0]  %s892_s3, 2048, %s823_s23, [#allocation9], %s760_s1, %s760_s1, %s761_s17  }
  0x45   :  { %748 = dma.done.wait [#allocation3], 256  }
  0x46   :  { %749 = vsyncadd [#allocation3], 4294967040 }
  0x47   :  { %750 = dma.done.wait [#allocation6], 6144  }
  0x48   :  { %751 = vsyncadd [#allocation6], 4294961152 }
  0x49   :  { %752 = dma.done.wait [#allocation9], 2048  }
  0x4a   :  { %753 = vsyncadd [#allocation9], 4294965248  ;;  %v764_v0 = vmov 0.0   ;;  %v79_v1 = vld [vmem:[#allocation5 + $0x8] sm:$0xff]  ;;  %v81_v2 = vld [vmem:[#allocation5 + $0x18] sm:$0xff]  ;;  %s765_s25 = smov [#allocation10]  }
  0x4b   :  { %174 = vmatprep.mubr.f32.mxu0 %v764_v0  ;;  %v78_v3 = vld [vmem:[#allocation5] sm:$0xff]  ;;  %v532_v4 = vpack.c.bf16 %v81_v2, %v79_v1  ;;  %v80_v5 = vld [vmem:[#allocation5 + $0x10] sm:$0xff]  ;;  %v83_v6 = vld [vmem:[#allocation5 + $0x28] sm:$0xff]  ;;  %s408_s26 = sshll.u32 %s765_s25, 4  ;;  %s409_s26 = int_to_ptr.vmem [resolvable:$true] %s408_s26 }
  0x4c   :  { %v85_v7 = vld [vmem:[#allocation5 + $0x38] sm:$0xff]  ;;  %v534_v8 = vpack.c.bf16 %v80_v5, %v78_v3  ;;  %v82_v10 = vld [vmem:[#allocation5 + $0x20] sm:$0xff]  ;;  %v84_v11 = vld [vmem:[#allocation5 + $0x30] sm:$0xff]  ;;  %s726_s27 = scalar_lea.vmem %s409_s26, 256  ;;  %p731_p5 = scmp.lt.s32.totalorder %s409_s26, %s409_s26 }
  0x4d   :  { %v536_v9 = vpack.c.bf16 %v85_v7, %v83_v6  ;;  %v87_v12 = vld [vmem:[#allocation5 + $0x48] sm:$0xff]  ;;  %533 = vmatprep.subr.bf16.mxu0 %v532_v4  ;;  %v89_v13 = vld [vmem:[#allocation5 + $0x58] sm:$0xff]  ;;  %v538_v14 = vpack.c.bf16 %v84_v11, %v82_v10  ;;  %v86_v16 = vld [vmem:[#allocation5 + $0x40] sm:$0xff]  ;;  %p727_p4 = scmp.ne.s32.totalorder %s409_s26, %s726_s27  ;;  %p732_p6 = scmp.lt.s32.totalorder %s726_s27, %s726_s27 }
  0x4e   :  { %535 = vmatpush1.bf16.msra.mxu0 %v534_v8  ;;  %v540_v15 = vpack.c.bf16 %v89_v13, %v87_v12  ;;  %v88_v17 = vld [vmem:[#allocation5 + $0x50] sm:$0xff]  ;;  %v91_v18 = vld [vmem:[#allocation5 + $0x68] sm:$0xff]  ;;  %v93_v19 = vld [vmem:[#allocation5 + $0x78] sm:$0xff] }
  0x4f   :  { %537 = vmatprep.subr.bf16.mxu0 %v536_v9  ;;  %v542_v20 = vpack.c.bf16 %v88_v17, %v86_v16  ;;  %v544_v21 = vpack.c.bf16 %v93_v19, %v91_v18  ;;  %v90_v22 = vld [vmem:[#allocation5 + $0x60] sm:$0xff]  ;;  %v92_v23 = vld [vmem:[#allocation5 + $0x70] sm:$0xff]  ;;  %v95_v24 = vld [vmem:[#allocation5 + $0x88] sm:$0xff]  ;;  %p733_p7 = por %p732_p6, %p731_p5 }
  0x50   :  { %v97_v25 = vld [vmem:[#allocation5 + $0x98] sm:$0xff]  ;;  %v203_v26 = vld [vmem:[#allocation7] sm:$0xff]  ;;  %v204_v27 = vld [vmem:[#allocation7 + $0x8] sm:$0xff]  ;;  %v546_v28 = vpack.c.bf16 %v92_v23, %v90_v22 }
  0x51   :  { %v94_v29 = vld [vmem:[#allocation5 + $0x80] sm:$0xff]  ;;  %v564_v30 = vpack.c.bf16 %v204_v27, %v203_v26  ;;  %v205_v31 = vld [vmem:[#allocation7 + $0x10] sm:$0xff]  ;;  %v206_v32 = vld [vmem:[#allocation7 + $0x18] sm:$0xff]  ;;  %v548_v33 = vpack.c.bf16 %v97_v25, %v95_v24  ;;  %p734_p8 = pnand %p733_p7, %p727_p4 }
  0x52   :  { %539 = vmatpush1.bf16.msra.mxu0 %v538_v14  ;;  %v96_v34 = vld [vmem:[#allocation5 + $0x90] sm:$0xff]  ;;  %v568_v35 = vpack.c.bf16 %v206_v32, %v205_v31  ;;  %v207_v36 = vld [vmem:[#allocation7 + $0x20] sm:$0xff]  ;;  %v208_v37 = vld [vmem:[#allocation7 + $0x28] sm:$0xff] }
  0x53   :  { %541 = vmatprep.subr.bf16.mxu0 %v540_v15  ;;  %v99_v38 = vld [vmem:[#allocation5 + $0xa8] sm:$0xff]  ;;  %v101_v39 = vld [vmem:[#allocation5 + $0xb8] sm:$0xff]  ;;  %565 = vmatprep.subr.bf16.mxu1 %v564_v30  ;;  %v550_v40 = vpack.c.bf16 %v96_v34, %v94_v29  ;;  %v98_v41 = vld [vmem:[#allocation5 + $0xa0] sm:$0xff]  ;;  %v572_v42 = vpack.c.bf16 %v208_v37, %v207_v36 }
  0x54   :  { %567 = vmatpush3.bf16.msra.mxu1 %v564_v30  ;;  %v552_v43 = vpack.c.bf16 %v101_v39, %v99_v38  ;;  %v100_v44 = vld [vmem:[#allocation5 + $0xb0] sm:$0xff]  ;;  %v210_v46 = vld [vmem:[#allocation7 + $0x38] sm:$0xff]  ;;  %v103_v47 = vld [vmem:[#allocation5 + $0xc8] sm:$0xff] }
  0x55   :  { %569 = vmatprep.subr.bf16.mxu1 %v568_v35  ;;  %v209_v45 = vld [vmem:[#allocation7 + $0x30] sm:$0xff]  ;;  %v105_v48 = vld [vmem:[#allocation5 + $0xd8] sm:$0xff]  ;;  %v554_v49 = vpack.c.bf16 %v100_v44, %v98_v41  ;;  %v102_v50 = vld [vmem:[#allocation5 + $0xc0] sm:$0xff] }
  0x56   :  { %543 = vmatpush1.bf16.msra.mxu0 %v542_v20  ;;  %v576_v51 = vpack.c.bf16 %v210_v46, %v209_v45  ;;  %v556_v52 = vpack.c.bf16 %v105_v48, %v103_v47  ;;  %v104_v53 = vld [vmem:[#allocation5 + $0xd0] sm:$0xff]  ;;  %v211_v54 = vld [vmem:[#allocation7 + $0x40] sm:$0xff]  ;;  %v212_v55 = vld [vmem:[#allocation7 + $0x48] sm:$0xff] }
  0x57   :  { %545 = vmatprep.subr.bf16.mxu0 %v544_v21  ;;  %v107_v56 = vld [vmem:[#allocation5 + $0xe8] sm:$0xff]  ;;  %v109_v57 = vld [vmem:[#allocation5 + $0xf8] sm:$0xff]  ;;  %v558_v58 = vpack.c.bf16 %v104_v53, %v102_v50  ;;  %v106_v59 = vld [vmem:[#allocation5 + $0xe0] sm:$0xff]  ;;  %v580_v60 = vpack.c.bf16 %v212_v55, %v211_v54 }
  0x58   :  { %571 = vmatpush3.bf16.msra.mxu1 %v568_v35  ;;  %v560_v61 = vpack.c.bf16 %v109_v57, %v107_v56  ;;  %v108_v62 = vld [vmem:[#allocation5 + $0xf0] sm:$0xff]  ;;  %v214_v1 = vld [vmem:[#allocation7 + $0x58] sm:$0xff]  ;;  %v215_v6 = vld [vmem:[#allocation7 + $0x60] sm:$0xff] }
  0x59   :  { %573 = vmatprep.subr.bf16.mxu1 %v572_v42  ;;  %v213_v63 = vld [vmem:[#allocation7 + $0x50] sm:$0xff]  ;;  %v562_v2 = vpack.c.bf16 %v108_v62, %v106_v59  ;;  %v77_v5 = vld [vmem:[#allocation2 + $0x8] sm:$0xff]  ;;  %v216_v7 = vld [vmem:[#allocation7 + $0x68] sm:$0xff] }
  0x5a   :  { %547 = vmatpush1.bf16.msra.mxu0 %v546_v28  ;;  %v584_v3 = vpack.c.bf16 %v214_v1, %v213_v63  ;;  %v76_v4 = vld [vmem:[#allocation2] sm:$0xff]  ;;  %v588_v8 = vpack.c.bf16 %v216_v7, %v215_v6  ;;  %v218_v10 = vld [vmem:[#allocation7 + $0x78] sm:$0xff]  ;;  %v301_v12 = vld [vmem:[#allocation8] sm:$0xff] }
  0x5b   :  { %549 = vmatprep.subr.bf16.mxu0 %v548_v33  ;;  %v217_v9 = vld [vmem:[#allocation7 + $0x70] sm:$0xff]  ;;  %v302_v13 = vld [vmem:[#allocation8 + $0x8] sm:$0xff]  ;;  %v304_v16 = vld [vmem:[#allocation8 + $0x18] sm:$0xff] }
  0x5c   :  { %575 = vmatpush3.bf16.msra.mxu1 %v572_v42  ;;  %v592_v11 = vpack.c.bf16 %v218_v10, %v217_v9  ;;  %v303_v14 = vld [vmem:[#allocation8 + $0x10] sm:$0xff]  ;;  %v596_v15 = vpack.c.bf16 %v302_v13, %v301_v12  ;;  %v305_v18 = vld [vmem:[#allocation8 + $0x20] sm:$0xff]  ;;  %v308_v21 = vld [vmem:[#allocation8 + $0x38] sm:$0xff] }
  0x5d   :  { %577 = vmatprep.subr.bf16.mxu1 %v576_v51  ;;  %v600_v17 = vpack.c.bf16 %v304_v16, %v303_v14  ;;  %v307_v20 = vld [vmem:[#allocation8 + $0x30] sm:$0xff]  ;;  %v309_v23 = vld [vmem:[#allocation8 + $0x40] sm:$0xff]  ;;  %v310_v24 = vld [vmem:[#allocation8 + $0x48] sm:$0xff] }
  0x5e   :  { %551 = vmatpush1.bf16.msra.mxu0 %v550_v40  ;;  %v608_v22 = vpack.c.bf16 %v308_v21, %v307_v20  ;;  %v612_v25 = vpack.c.bf16 %v310_v24, %v309_v23  ;;  %v311_v26 = vld [vmem:[#allocation8 + $0x50] sm:$0xff]  ;;  %v312_v27 = vld [vmem:[#allocation8 + $0x58] sm:$0xff]  ;;  %v313_v29 = vld [vmem:[#allocation8 + $0x60] sm:$0xff] }
  0x5f   :  { %553 = vmatprep.subr.bf16.mxu0 %v552_v43  ;;  %v616_v28 = vpack.c.bf16 %v312_v27, %v311_v26  ;;  %v314_v30 = vld [vmem:[#allocation8 + $0x68] sm:$0xff]  ;;  %v422_v32 = vld [vmem:[%s893_s4] ss:$0 sm:$0xff]  ;;  %v316_v42 = vld [vmem:[#allocation8 + $0x78] sm:$0xff] }
  0x60   :  { %579 = vmatpush3.bf16.msra.mxu1 %v576_v51  ;;  %v620_v31 = vpack.c.bf16 %v314_v30, %v313_v29  ;;  %v315_v41 = vld [vmem:[#allocation8 + $0x70] sm:$0xff] }
  0x61   :  { %581 = vmatprep.subr.bf16.mxu1 %v580_v60  ;;  %v624_v43 = vpack.c.bf16 %v316_v42, %v315_v41  ;;  %v424_v44 = vld [vmem:[%s893_s4 + $0x2] ss:$0 sm:$0xff]  ;;  %v425_v51 = vld [vmem:[%s893_s4 + $0x3] ss:$0 sm:$0xff]  ;;  %v423_v53 = vld [vmem:[%s893_s4 + $0x1] ss:$0 sm:$0xff] }
  0x62   :  { %555 = vmatpush1.bf16.msra.mxu0 %v554_v49 }
  0x63   :  { %557 = vmatprep.subr.bf16.mxu0 %v556_v52 }
  0x64   :  { %583 = vmatpush3.bf16.msra.mxu1 %v580_v60 }
  0x65   :  { %585 = vmatprep.subr.bf16.mxu1 %v584_v3 }
  0x66   :  { %559 = vmatpush1.bf16.msra.mxu0 %v558_v58 }
  0x67   :  { %561 = vmatprep.subr.bf16.mxu0 %v560_v61 }
  0x68   :  { %587 = vmatpush3.bf16.msra.mxu1 %v584_v3 }
  0x69   :  { %589 = vmatprep.subr.bf16.mxu1 %v588_v8 }
  0x6a   :  { %563 = vmatpush1.bf16.msra.mxu0 %v562_v2 }
  0x6b   :  { %597 = vmatprep.subr.bf16.mxu0 %v596_v15 }
  0x6c   :  { %591 = vmatpush3.bf16.msra.mxu1 %v588_v8 }
  0x6d   :  { %175 = vmatmul.mubr.f32.vlgmr.msra.gmra.mrb[0].mxu0 %v76_v4  ;;  %593 = vmatprep.subr.bf16.mxu1 %v592_v11 }
  0x6e   :  { %180 = vmatprep.mubr.f32.mxu0 %v764_v0  ;;  %v306_v0 = vld [vmem:[#allocation8 + $0x28] sm:$0xff]  ;;  %599 = vmatpush3.bf16.msra.mxu0 %v596_v15 }
  0x6f   :  { %601 = vmatprep.subr.bf16.mxu0 %v600_v17  ;;  %v604_v19 = vpack.c.bf16 %v306_v0, %v305_v18 }
  0x70   :  { %595 = vmatpush3.bf16.msra.mxu1 %v592_v11 }
  0x71   :  { %181 = vmatmul.mubr.f32.gmra.mrb[2].mxu0 %v77_v5 }
  0x72   :  { %603 = vmatpush3.bf16.msra.mxu0 %v600_v17 }
  0x73   :  { %605 = vmatprep.subr.bf16.mxu0 %v604_v19 }
  0x76   :  { %607 = vmatpush3.bf16.msra.mxu0 %v604_v19 }
  0x77   :  { %609 = vmatprep.subr.bf16.mxu0 %v608_v22 }
  0x7a   :  { %611 = vmatpush3.bf16.msra.mxu0 %v608_v22 }
  0x7b   :  { %613 = vmatprep.subr.bf16.mxu0 %v612_v25 }
  0x7e   :  { %615 = vmatpush3.bf16.msra.mxu0 %v612_v25 }
  0x7f   :  { %617 = vmatprep.subr.bf16.mxu0 %v616_v28 }
  0x82   :  { %619 = vmatpush3.bf16.msra.mxu0 %v616_v28 }
  0x83   :  { %621 = vmatprep.subr.bf16.mxu0 %v620_v31 }
  0x86   :  { %623 = vmatpush3.bf16.msra.mxu0 %v620_v31 }
  0x87   :  { %625 = vmatprep.subr.bf16.mxu0 %v624_v43 }
  0x8a   :  { %627 = vmatpush3.bf16.msra.mxu0 %v624_v43 }
 0x140   :  { %v176_v33 = vpop.f32.mrb[0].mxu0 }
 0x141   :  { %v178_v34 = vpop.f32.mrb[1].mxu0  ;;  %v192_v35 = vadd.f32 %v422_v32, %v176_v33 }
 0x142   :  { %v201_v59 = vadd.f32 %v423_v53, %v178_v34 }
 0x143   :  { %v194_v36 = vmax.f32 %v192_v35, 0.0 }
 0x144   :  { %v182_v37 = vpop.f32.mrb[2].mxu0 }
 0x145   :  { %v193_v38 = vadd.f32 %v422_v32, %v182_v37  ;;  %v184_v39 = vpop.f32.mrb[3].mxu0  ;;  %494 = vmatprep.mubr.f32.mxu1 %v194_v36 }
 0x146   :  { %v202_v57 = vadd.f32 %v423_v53, %v184_v39 }
 0x147   :  { %v195_v40 = vmax.f32 %v193_v38, 0.0 }
 0x149   :  { %495 = vmatmul.mubr.f32.vlgmr.msra.gmra.mrb[0].mxu1 %v195_v40 }
 0x21c   :  { %v496_v45 = vpop.f32.mrb[0].mxu1 }
 0x21d   :  { %v296_v46 = vadd.f32 %v496_v45, %v424_v44  ;;  %v290_v47 = vpop.f32.mrb[1].mxu1 }
 0x21e   :  { %v291_v48 = vadd.f32 %v424_v44, %v290_v47 }
 0x21f   :  { %v300_v50 = vmax.f32 %v296_v46, 0.0 }
 0x220   :  { %v299_v49 = vmax.f32 %v291_v48, 0.0 }
 0x222   :  { %529 = vmatprep.mubr.f32.mxu0 %v299_v49 }
 0x223   :  { %530 = vmatmul.mubr.f32.vlgmr.msra.gmra.mrb[4].mxu0 %v300_v50 }
 0x2f6   :  { %v531_v52 = vpop.f32.mrb[4].mxu0 }
 0x2f7   :  { %v394_v54 = vadd.f32 %v531_v52, %v425_v51  ;;  %v388_v55 = vpop.f32.mrb[5].mxu0 }
 0x2f8   :  { %v389_v56 = vadd.f32 %v425_v51, %v388_v55 }
 0x2f9   :  { %v398_v58 = vmax.f32 %v394_v54, 0.0 }
 0x2fa   :  { %v397_v60 = vmax.f32 %v389_v56, 0.0 }
 0x2fb   :  { %v400_v61 = vadd.f32 %v398_v58, %v202_v57 }
 0x2fc   :  { %v399_v62 = vadd.f32 %v397_v60, %v201_v59 }
 0x2fd   :  { %402 = vst [vmem:[#allocation10 + $0x8] sm:$0xff] %v400_v61 }
 0x2fe   :  { %401 = vst [vmem:[#allocation10] sm:$0xff] %v399_v62 }
 0x2ff   :  { %737 = shalt.err (!%p734_p8)
}
 0x300   :  { %s738_s29 = scalar_lea.hbm %s894_s5, 256 }
 0x301   :  { %p739_p9 = scmp.ne.s32.totalorder %s894_s5, %s738_s29  ;;  %p742_p10 = scmp.lt.u32.totalorder %s738_s29, %s894_s5 }
 0x303   :  { %p744_p11 = pnand %p742_p10, %p739_p9 }
 0x305   :  { %747 = shalt.err (!%p744_p11)
}
 0x306   :  { %414 = dma.vmem_to_hbm [thread:$0]  %s409_s26, 256, %s894_s5, [#allocation4], %s760_s1, %s760_s1, %s761_s17  }
 0x307   :  { %754 = dma.done.wait [#allocation4], 256  }
 0x308   :  { %755 = vsyncadd [#allocation4], 4294967040 }
 0x309   :  { %418 = vsyncpa [#allocation3], 1 }
 0x30a   :  { %419 = vsyncpa [#allocation6], 1 }
 0x30b   :  { %420 = vsyncpa [#allocation9], 1 }
 0x30c   :  { %421 = vsyncpa [#allocation4], 1 }

</bundles_post_ra>
